<compile_context>
chip_gen: v5e
topology: v5e:2x2
jax: 0.10.0
libtpu: 0.0.40
codegen_flags: <defaults>
</compile_context>

<pallas_src>
import math

import jax
import jax.numpy as jnp
from jax.experimental import pallas as pl
from jax.experimental.pallas import tpu as pltpu

LN_EPS = 1e-5  # PyTorch nn.LayerNorm default


def _residual_layer_kernel(x_ref, g_ref, be_ref, w1_ref, b1_ref,
                           w2_ref, b2_ref, o_ref):
    # x_ref block: (TM, F), lane-dense (F on the 128-lane axis).
    x = x_ref[...].astype(jnp.float32)                        # (TM, F)
    feat = x.shape[-1]
    inv_f = 1.0 / float(feat)

    # ---- LayerNorm over the feature axis (two-pass stats, f32) ----
    mean = jnp.sum(x, axis=-1, keepdims=True) * inv_f          # (TM, 1)
    xc = x - mean
    var = jnp.sum(xc * xc, axis=-1, keepdims=True) * inv_f     # (TM, 1)
    xn = xc * jax.lax.rsqrt(var + LN_EPS)
    xn = xn * g_ref[...] + be_ref[...]                         # (1, F) affine

    # ---- Linear 1 (+ ReLU): bf16 operands into the MXU, f32 accumulation ----
    h = jnp.dot(xn.astype(jnp.bfloat16), w1_ref[...],
                preferred_element_type=jnp.float32)            # (TM, H)
    h = jnp.maximum(h + b1_ref[...], 0.0)

    # ---- Linear 2 ----
    y = jnp.dot(h.astype(jnp.bfloat16), w2_ref[...],
                preferred_element_type=jnp.float32)            # (TM, F)
    y = y + b2_ref[...]

    # ---- Residual add (f32 residual) ----
    o_ref[...] = (y + x).astype(o_ref.dtype)


def _round_up(n, m):
    return ((n + m - 1) // m) * m


def residual_layer(x, gamma, beta, w1, b1, w2, b2, *, block_rows=512):
    """x: (..., F). w1: (H, F), w2: (F, H) (PyTorch nn.Linear layout)."""
    assert block_rows % 8 == 0, "block_rows must be a multiple of 8"
    orig_shape = x.shape
    feat = orig_shape[-1]
    hid = w1.shape[0]
    rows = int(math.prod(orig_shape[:-1])) if len(orig_shape) > 1 else 1

    # Fold all leading dims into the matmul M axis -> lane-dense (rows, F).
    xf = x.reshape(rows, feat)

    # Row tile: single large step for small inputs, else block_rows-sized
    # aligned tiles.  Pad the row axis (zeros are LayerNorm-safe: var+eps > 0)
    # so every tile is full and stores are unmasked; slice the output after.
    rows8 = _round_up(rows, 8)
    tm = min(block_rows, rows8)
    padded_rows = _round_up(rows, tm)
    if padded_rows != rows:
        xf = jnp.pad(xf, ((0, padded_rows - rows), (0, 0)))
    grid = (padded_rows // tm,)

    # Pre-transpose weights (row-major matmuls in-kernel) and cast to bf16
    # so the MXU runs at its bf16 rate; biases/affine stay f32.
    w1t = jnp.transpose(w1).astype(jnp.bfloat16)   # (F, H)
    w2t = jnp.transpose(w2).astype(jnp.bfloat16)   # (H, F)
    g2 = gamma.reshape(1, feat).astype(jnp.float32)
    be2 = beta.reshape(1, feat).astype(jnp.float32)
    b1r = b1.reshape(1, hid).astype(jnp.float32)
    b2r = b2.reshape(1, feat).astype(jnp.float32)

    out = pl.pallas_call(
        _residual_layer_kernel,
        out_shape=jax.ShapeDtypeStruct((padded_rows, feat), x.dtype),
        grid=grid,
        in_specs=[
            pl.BlockSpec((tm, feat), lambda i: (i, 0)),     # x rows
            pl.BlockSpec((1, feat), lambda i: (0, 0)),      # LN gamma
            pl.BlockSpec((1, feat), lambda i: (0, 0)),      # LN beta
            pl.BlockSpec((feat, hid), lambda i: (0, 0)),    # W1^T (bf16)
            pl.BlockSpec((1, hid), lambda i: (0, 0)),       # b1
            pl.BlockSpec((hid, feat), lambda i: (0, 0)),    # W2^T (bf16)
            pl.BlockSpec((1, feat), lambda i: (0, 0)),      # b2
        ],
        out_specs=pl.BlockSpec((tm, feat), lambda i: (i, 0)),
        compiler_params=pltpu.CompilerParams(
            dimension_semantics=("parallel",)),
    )(xf, g2, be2, w1t, b1r, w2t, b2r)

    if padded_rows != rows:
        out = out[:rows]
    return out.reshape(orig_shape)


def _reference(x, gamma, beta, w1, b1, w2, b2):
    """Pure-f32 reference, identical math to the PyTorch module."""
    mean = jnp.mean(x, axis=-1, keepdims=True)
    var = jnp.mean((x - mean) ** 2, axis=-1, keepdims=True)
    xn = (x - mean) / jnp.sqrt(var + LN_EPS) * gamma + beta
    h = jnp.maximum(xn @ w1.T + b1, 0.0)
    y = h @ w2.T + b2
    return y + x


def _reference_bf16(x, gamma, beta, w1, b1, w2, b2):
    """Reference with the same bf16-operand / f32-accumulate matmuls."""
    mean = jnp.mean(x, axis=-1, keepdims=True)
    var = jnp.mean((x - mean) ** 2, axis=-1, keepdims=True)
    xn = (x - mean) * jax.lax.rsqrt(var + LN_EPS) * gamma + beta
    h = jnp.dot(xn.astype(jnp.bfloat16), w1.T.astype(jnp.bfloat16),
                preferred_element_type=jnp.float32) + b1
    h = jnp.maximum(h, 0.0)
    y = jnp.dot(h.astype(jnp.bfloat16), w2.T.astype(jnp.bfloat16),
                preferred_element_type=jnp.float32) + b2
    return y + x


if __name__ == "__main__":
    # Small shapes consistent with the module: batch=2, seq=8,
    # n_features=128 (lane-dense), n_hidden=256.
    B, S, F, H = 2, 8, 128, 256

    key = jax.random.PRNGKey(0)
    kx, k1, k2, k3, k4, k5, k6 = jax.random.split(key, 7)

    x = jax.random.normal(kx, (B, S, F), jnp.float32)

    # Deterministic synthetic parameters (shapes match the PyTorch module).
    gamma = 1.0 + 0.1 * jax.random.normal(k1, (F,), jnp.float32)
    beta = 0.1 * jax.random.normal(k2, (F,), jnp.float32)
    w1 = 0.1 * jax.random.normal(k3, (H, F), jnp.float32)
    b1 = 0.1 * jax.random.normal(k4, (H,), jnp.float32)
    w2 = 0.1 * jax.random.normal(k5, (F, H), jnp.float32)
    b2 = 0.1 * jax.random.normal(k6, (F,), jnp.float32)

    out = residual_layer(x, gamma, beta, w1, b1, w2, b2)
    out = jax.block_until_ready(out)
    assert out.shape == (B, S, F)

    # Tight check against a reference using the same bf16-into-MXU precision.
    ref_bf16 = jax.block_until_ready(
        _reference_bf16(x, gamma, beta, w1, b1, w2, b2))
    assert jnp.allclose(out, ref_bf16, atol=2e-3, rtol=2e-3)

    # Loose check against the exact f32 PyTorch-equivalent math (bf16 matmul
    # operands are a deliberate precision/perf tradeoff).
    ref = jax.block_until_ready(_reference(x, gamma, beta, w1, b1, w2, b2))
    assert jnp.allclose(out, ref, atol=5e-2, rtol=5e-2)

    print("KERNEL_OK")
</pallas_src>

<mosaic_0001>
module attributes {stable_mosaic.version = 11 : i64} {
  func.func @_residual_layer_kernel(%arg0: i32, %arg1: memref<16x128xf32, #tpu.memory_space<vmem>>, %arg2: memref<1x128xf32, #tpu.memory_space<vmem>>, %arg3: memref<1x128xf32, #tpu.memory_space<vmem>>, %arg4: memref<128x256xbf16, #tpu.memory_space<vmem>>, %arg5: memref<1x256xf32, #tpu.memory_space<vmem>>, %arg6: memref<256x128xbf16, #tpu.memory_space<vmem>>, %arg7: memref<1x128xf32, #tpu.memory_space<vmem>>, %arg8: memref<16x128xf32, #tpu.memory_space<vmem>>) attributes {dimension_semantics = [#tpu.dimension_semantics<parallel>], iteration_bounds = array<i64: 1>, scalar_prefetch = 0 : i64, scratch_operands = 0 : i64, tpu.core_type = #tpu.core_type<tc>, window_params = [{transform_indices = @transform_0, window_bounds = array<i64: 16, 128>}, {pipeline_mode = #tpu.pipeline_mode<synchronous>, transform_indices = @transform_1, window_bounds = array<i64: 1, 128>}, {pipeline_mode = #tpu.pipeline_mode<synchronous>, transform_indices = @transform_2, window_bounds = array<i64: 1, 128>}, {pipeline_mode = #tpu.pipeline_mode<synchronous>, transform_indices = @transform_3, window_bounds = array<i64: 128, 256>}, {pipeline_mode = #tpu.pipeline_mode<synchronous>, transform_indices = @transform_4, window_bounds = array<i64: 1, 256>}, {pipeline_mode = #tpu.pipeline_mode<synchronous>, transform_indices = @transform_5, window_bounds = array<i64: 256, 128>}, {pipeline_mode = #tpu.pipeline_mode<synchronous>, transform_indices = @transform_6, window_bounds = array<i64: 1, 128>}, {transform_indices = @transform_7, window_bounds = array<i64: 16, 128>}]} {
    %c0 = arith.constant 0 : index
    %c0_0 = arith.constant 0 : index
    %0 = vector.load %arg1[%c0, %c0_0] : memref<16x128xf32, #tpu.memory_space<vmem>>, vector<16x128xf32>
    %cst = arith.constant dense<0.000000e+00> : vector<16xf32>
    %1 = vector.multi_reduction <add>, %0, %cst [1] : vector<16x128xf32> to vector<16xf32>
    %2 = vector.shape_cast %1 : vector<16xf32> to vector<16x1xf32>
    %cst_1 = arith.constant 7.812500e-03 : f32
    %3 = vector.broadcast %cst_1 : f32 to vector<16x1xf32>
    %4 = arith.mulf %2, %3 : vector<16x1xf32>
    %5 = vector.broadcast %4 : vector<16x1xf32> to vector<16x128xf32>
    %6 = arith.subf %0, %5 : vector<16x128xf32>
    %7 = arith.mulf %6, %6 : vector<16x128xf32>
    %cst_2 = arith.constant dense<0.000000e+00> : vector<16xf32>
    %8 = vector.multi_reduction <add>, %7, %cst_2 [1] : vector<16x128xf32> to vector<16xf32>
    %9 = vector.shape_cast %8 : vector<16xf32> to vector<16x1xf32>
    %cst_3 = arith.constant 7.812500e-03 : f32
    %10 = vector.broadcast %cst_3 : f32 to vector<16x1xf32>
    %11 = arith.mulf %9, %10 : vector<16x1xf32>
    %cst_4 = arith.constant 9.99999974E-6 : f32
    %12 = vector.broadcast %cst_4 : f32 to vector<16x1xf32>
    %13 = arith.addf %11, %12 : vector<16x1xf32>
    %14 = math.rsqrt %13 : vector<16x1xf32>
    %15 = vector.broadcast %14 : vector<16x1xf32> to vector<16x128xf32>
    %16 = arith.mulf %6, %15 : vector<16x128xf32>
    %c0_5 = arith.constant 0 : index
    %c0_6 = arith.constant 0 : index
    %17 = vector.load %arg2[%c0_5, %c0_6] : memref<1x128xf32, #tpu.memory_space<vmem>>, vector<1x128xf32>
    %18 = vector.broadcast %17 : vector<1x128xf32> to vector<16x128xf32>
    %19 = arith.mulf %16, %18 : vector<16x128xf32>
    %c0_7 = arith.constant 0 : index
    %c0_8 = arith.constant 0 : index
    %20 = vector.load %arg3[%c0_7, %c0_8] : memref<1x128xf32, #tpu.memory_space<vmem>>, vector<1x128xf32>
    %21 = vector.broadcast %20 : vector<1x128xf32> to vector<16x128xf32>
    %22 = arith.addf %19, %21 : vector<16x128xf32>
    %23 = arith.truncf %22 : vector<16x128xf32> to vector<16x128xbf16>
    %c0_9 = arith.constant 0 : index
    %c0_10 = arith.constant 0 : index
    %24 = vector.load %arg4[%c0_9, %c0_10] : memref<128x256xbf16, #tpu.memory_space<vmem>>, vector<128x256xbf16>
    %cst_11 = arith.constant dense<0.000000e+00> : vector<16x256xf32>
    %25 = tpu.matmul %23, %24, %cst_11 {dimension_numbers = #tpu.dot_dimension_numbers<[1], [0], [0], [1], [0, 0, 1, 1], [], []>} : vector<16x128xbf16>, vector<128x256xbf16>, vector<16x256xf32> -> vector<16x256xf32>
    %c0_12 = arith.constant 0 : index
    %c0_13 = arith.constant 0 : index
    %26 = vector.load %arg5[%c0_12, %c0_13] : memref<1x256xf32, #tpu.memory_space<vmem>>, vector<1x256xf32>
    %27 = vector.broadcast %26 : vector<1x256xf32> to vector<16x256xf32>
    %28 = arith.addf %25, %27 : vector<16x256xf32>
    %cst_14 = arith.constant 0.000000e+00 : f32
    %29 = vector.broadcast %cst_14 : f32 to vector<16x256xf32>
    %30 = arith.maximumf %28, %29 : vector<16x256xf32>
    %31 = arith.truncf %30 : vector<16x256xf32> to vector<16x256xbf16>
    %c0_15 = arith.constant 0 : index
    %c0_16 = arith.constant 0 : index
    %32 = vector.load %arg6[%c0_15, %c0_16] : memref<256x128xbf16, #tpu.memory_space<vmem>>, vector<256x128xbf16>
    %cst_17 = arith.constant dense<0.000000e+00> : vector<16x128xf32>
    %33 = tpu.matmul %31, %32, %cst_17 {dimension_numbers = #tpu.dot_dimension_numbers<[1], [0], [0], [1], [0, 0, 1, 1], [], []>} : vector<16x256xbf16>, vector<256x128xbf16>, vector<16x128xf32> -> vector<16x128xf32>
    %c0_18 = arith.constant 0 : index
    %c0_19 = arith.constant 0 : index
    %34 = vector.load %arg7[%c0_18, %c0_19] : memref<1x128xf32, #tpu.memory_space<vmem>>, vector<1x128xf32>
    %35 = vector.broadcast %34 : vector<1x128xf32> to vector<16x128xf32>
    %36 = arith.addf %33, %35 : vector<16x128xf32>
    %37 = arith.addf %36, %0 : vector<16x128xf32>
    %c0_20 = arith.constant 0 : index
    %c0_21 = arith.constant 0 : index
    %38 = vector.load %arg8[%c0_20, %c0_21] : memref<16x128xf32, #tpu.memory_space<vmem>>, vector<16x128xf32>
    tpu.vector_store %arg8[%c0_20, %c0_21], %37 {strides = array<i32>} : memref<16x128xf32, #tpu.memory_space<vmem>>, vector<16x128xf32>,
    return
  }
  func.func @transform_0(%arg0: i32) -> (i32, i32) {
    %c0_i32 = arith.constant 0 : i32
    %c0_i32_0 = arith.constant 0 : i32
    return %arg0, %c0_i32 : i32, i32
  }
  func.func @transform_1(%arg0: i32) -> (i32, i32) {
    %c0_i32 = arith.constant 0 : i32
    %c0_i32_0 = arith.constant 0 : i32
    %c0_i32_1 = arith.constant 0 : i32
    return %c0_i32, %c0_i32_0 : i32, i32
  }
  func.func @transform_2(%arg0: i32) -> (i32, i32) {
    %c0_i32 = arith.constant 0 : i32
    %c0_i32_0 = arith.constant 0 : i32
    %c0_i32_1 = arith.constant 0 : i32
    return %c0_i32, %c0_i32_0 : i32, i32
  }
  func.func @transform_3(%arg0: i32) -> (i32, i32) {
    %c0_i32 = arith.constant 0 : i32
    %c0_i32_0 = arith.constant 0 : i32
    %c0_i32_1 = arith.constant 0 : i32
    return %c0_i32, %c0_i32_0 : i32, i32
  }
  func.func @transform_4(%arg0: i32) -> (i32, i32) {
    %c0_i32 = arith.constant 0 : i32
    %c0_i32_0 = arith.constant 0 : i32
    %c0_i32_1 = arith.constant 0 : i32
    return %c0_i32, %c0_i32_0 : i32, i32
  }
  func.func @transform_5(%arg0: i32) -> (i32, i32) {
    %c0_i32 = arith.constant 0 : i32
    %c0_i32_0 = arith.constant 0 : i32
    %c0_i32_1 = arith.constant 0 : i32
    return %c0_i32, %c0_i32_0 : i32, i32
  }
  func.func @transform_6(%arg0: i32) -> (i32, i32) {
    %c0_i32 = arith.constant 0 : i32
    %c0_i32_0 = arith.constant 0 : i32
    %c0_i32_1 = arith.constant 0 : i32
    return %c0_i32, %c0_i32_0 : i32, i32
  }
  func.func @transform_7(%arg0: i32) -> (i32, i32) {
    %c0_i32 = arith.constant 0 : i32
    %c0_i32_0 = arith.constant 0 : i32
    return %arg0, %c0_i32 : i32, i32
  }
}

</mosaic_0001>

<bundles_post_ra>
// kernel: tpu_custom_call.1
= control target key start
LH: loop header
LB: loop body
LE: loop exit
PB: predicated region body
PF: predicated region fallthrough
CT: control target
= control target key end

     0   :  { %12 = vsyncpa [#allocation3], 0  ;;  %s870_s0 = inlined_call_operand.hbm [shape: f32[16,128], index: 0, kind: input, shape index: {}]   ;;  %s871_s1 = inlined_call_operand.hbm [shape: f32[1,128], index: 1, kind: input, shape index: {}]   ;;  %s872_s2 = inlined_call_operand.vmem [shape: f32[1,128], index: 2, kind: input, shape index: {}]   ;;  %s873_s3 = inlined_call_operand.hbm [shape: bf16[128,256], index: 3, kind: input, shape index: {}]   ;;  %s874_s4 = inlined_call_operand.vmem [shape: f32[1,256], index: 4, kind: input, shape index: {}]   ;;  %s875_s5 = inlined_call_operand.hbm [shape: bf16[256,128], index: 5, kind: input, shape index: {}]   ;;  %s876_s6 = inlined_call_operand.vmem [shape: f32[1,128], index: 6, kind: input, shape index: {}]   ;;  %s877_s7 = inlined_call_operand.hbm [shape: f32[16,128], index: 7, kind: output, shape index: {}]  }
   0x1   :  { %13 = vsyncpa [#allocation6], 0 }
   0x2   :  { %14 = vsyncpa [#allocation9], 0  ;;  %s34_s26 = sshll.u32 %s871_s1, 4  ;;  %s35_s26 = int_to_ptr.hbm [resolvable:$true] %s34_s26 }
   0x3   :  { %15 = vsyncpa [#allocation4], 0  ;;  %s768_s27 = smov [#allocation5]   ;;  %s20_s8 = sshll.u32 %s870_s0, 4  ;;  %s21_s8 = int_to_ptr.hbm [resolvable:$true] %s20_s8 }
   0x4   :  { %s36_s28 = sshll.u32 %s768_s27, 4  ;;  %s769_s9 = smov [#allocation2]   ;;  %s37_s28 = int_to_ptr.vmem [resolvable:$true] %s36_s28 }
   0x5   :  { %39 = dma.hbm_to_vmem [thread:$0]  %s35_s26, 16, %s37_s28, [#allocation6]  }
   0x6   :  { %s22_s10 = sshll.u32 %s769_s9, 4  ;;  %s770_s11 = smov 128   ;;  %s23_s10 = int_to_ptr.vmem [resolvable:$true] %s22_s10 }
   0x7   :  { %s771_s12 = smov 8   ;;  %s46_s14 = sshll.u32 %s873_s3, 4  ;;  %s47_s14 = int_to_ptr.hbm [resolvable:$true] %s46_s14 }
   0x8   :  { %28 = dma.hbm_to_vmem [thread:$0]  %s21_s8, 256, %s23_s10, [#allocation3], %s770_s11, %s770_s11, %s771_s12  }
   0x9   :  { %s772_s15 = smov [#allocation7]   ;;  %s61_s18 = sshll.u32 %s875_s5, 4  ;;  %s62_s18 = int_to_ptr.hbm [resolvable:$true] %s61_s18 }
   0xa   :  { %s48_s16 = sshll.u32 %s772_s15, 4  ;;  %s773_s19 = smov [#allocation8]   ;;  %s49_s16 = int_to_ptr.vmem [resolvable:$true] %s48_s16 }
   0xb   :  { %54 = dma.hbm_to_vmem [thread:$0]  %s47_s14, 2048, %s49_s16, [#allocation6], %s770_s11, %s770_s11, %s771_s12  }
   0xc   :  { %s63_s20 = sshll.u32 %s773_s19, 4  ;;  %s774_s21 = smov 64   ;;  %s64_s20 = int_to_ptr.vmem [resolvable:$true] %s63_s20 }
   0xd   :  { %s775_s22 = smov 4  }
   0xe   :  { %69 = dma.hbm_to_vmem [thread:$0]  %s62_s18, 2048, %s64_s20, [#allocation9], %s774_s21, %s774_s21, %s775_s22  }
   0xf   :  { %760 = dma.done.wait [#allocation3], 256  }
  0x10   :  { %761 = vsyncadd [#allocation3], 4294967040 }
  0x11   :  { %762 = dma.done.wait [#allocation6], 2064  }
  0x12   :  { %763 = vsyncadd [#allocation6], 4294965232 }
  0x13   :  { %764 = dma.done.wait [#allocation9], 2048  }
  0x14   :  { %765 = vsyncadd [#allocation9], 4294965248  ;;  %v835_v0 = vld [vmem:[#allocation2] sm:$0xff]  ;;  %v838_v1 = vld [vmem:[#allocation2 + $0x8] sm:$0xff]  ;;  %s776_s25 = smov [#allocation10]   ;;  %s449_s29 = sshll.u32 %s877_s7, 4  ;;  %s450_s29 = int_to_ptr.hbm [resolvable:$true] %s449_s29 }
  0x15   :  { %90 = vadd.xlane.f32.xlu0 %v835_v0  ;;  %v522_v10 = vld [vmem:[#allocation7 + $0x70] sm:$0xf]  ;;  %v607_v11 = vld [vmem:[#allocation7 + $0x74] sm:$0xf0]  ;;  %v606_v12 = vld [vmem:[#allocation7 + $0x74] sm:$0xf] }
  0x16   :  { %v523_v13 = vor.u32 %v607_v11, %v522_v10  ;;  %v524_v14 = vld [vmem:[#allocation7 + $0x78] sm:$0xf0]  ;;  %v514_v16 = vld [vmem:[#allocation7 + $0x60] sm:$0xf]  ;;  %v605_v17 = vld [vmem:[#allocation7 + $0x64] sm:$0xf0] }
  0x17   :  { %v527_v15 = vor.u32 %v606_v12, %v524_v14  ;;  %v604_v18 = vld [vmem:[#allocation7 + $0x64] sm:$0xf]  ;;  %v515_v19 = vor.u32 %v605_v17, %v514_v16  ;;  %v516_v20 = vld [vmem:[#allocation7 + $0x68] sm:$0xf0]  ;;  %v506_v22 = vld [vmem:[#allocation7 + $0x50] sm:$0xf] }
  0x18   :  { %245 = vmatpush.bf16.msra.mxu0 %v523_v13  ;;  %v519_v21 = vor.u32 %v604_v18, %v516_v20  ;;  %v603_v23 = vld [vmem:[#allocation7 + $0x54] sm:$0xf0]  ;;  %v602_v24 = vld [vmem:[#allocation7 + $0x54] sm:$0xf]  ;;  %v508_v26 = vld [vmem:[#allocation7 + $0x58] sm:$0xf0] }
  0x19   :  { %259 = vmatpush.bf16.msra.mxu1 %v527_v15  ;;  %v507_v25 = vor.u32 %v603_v23, %v506_v22  ;;  %v511_v27 = vor.u32 %v602_v24, %v508_v26  ;;  %v498_v28 = vld [vmem:[#allocation7 + $0x40] sm:$0xf]  ;;  %v601_v29 = vld [vmem:[#allocation7 + $0x44] sm:$0xf0]  ;;  %v600_v30 = vld [vmem:[#allocation7 + $0x44] sm:$0xf] }
  0x1a   :  { %v499_v31 = vor.u32 %v601_v29, %v498_v28  ;;  %v500_v32 = vld [vmem:[#allocation7 + $0x48] sm:$0xf0]  ;;  %v490_v34 = vld [vmem:[#allocation7 + $0x30] sm:$0xf]  ;;  %v599_v35 = vld [vmem:[#allocation7 + $0x34] sm:$0xf0] }
  0x1b   :  { %v503_v33 = vor.u32 %v600_v30, %v500_v32  ;;  %v598_v36 = vld [vmem:[#allocation7 + $0x34] sm:$0xf]  ;;  %v491_v37 = vor.u32 %v599_v35, %v490_v34  ;;  %v492_v38 = vld [vmem:[#allocation7 + $0x38] sm:$0xf0]  ;;  %v482_v40 = vld [vmem:[#allocation7 + $0x20] sm:$0xf] }
  0x1c   :  { %246 = vmatpush.bf16.msra.mxu0 %v515_v19  ;;  %v495_v39 = vor.u32 %v598_v36, %v492_v38  ;;  %v597_v41 = vld [vmem:[#allocation7 + $0x24] sm:$0xf0]  ;;  %v596_v42 = vld [vmem:[#allocation7 + $0x24] sm:$0xf]  ;;  %v484_v44 = vld [vmem:[#allocation7 + $0x28] sm:$0xf0] }
  0x1d   :  { %92 = vadd.xlane.f32.xlu0 %v838_v1  ;;  %260 = vmatpush.bf16.msra.mxu1 %v519_v21  ;;  %v483_v43 = vor.u32 %v597_v41, %v482_v40  ;;  %v487_v45 = vor.u32 %v596_v42, %v484_v44  ;;  %v474_v46 = vld [vmem:[#allocation7 + $0x10] sm:$0xf]  ;;  %v595_v47 = vld [vmem:[#allocation7 + $0x14] sm:$0xf0]  ;;  %v594_v48 = vld [vmem:[#allocation7 + $0x14] sm:$0xf] }
  0x1e   :  { %v475_v49 = vor.u32 %v595_v47, %v474_v46  ;;  %v476_v50 = vld [vmem:[#allocation7 + $0x18] sm:$0xf0]  ;;  %v466_v51 = vld [vmem:[#allocation7] sm:$0xf]  ;;  %v593_v52 = vld [vmem:[#allocation7 + $0x4] sm:$0xf0] }
  0x1f   :  { %v479_v53 = vor.u32 %v594_v48, %v476_v50  ;;  %v592_v54 = vld [vmem:[#allocation7 + $0x4] sm:$0xf]  ;;  %v468_v55 = vld [vmem:[#allocation7 + $0x8] sm:$0xf0]  ;;  %v467_v57 = vor.u32 %v593_v52, %v466_v51  ;;  %v615_v61 = vld [vmem:[#allocation8 + $0x38] sm:$0xff]  ;;  %s447_s26 = sshll.u32 %s776_s25, 4  ;;  %s448_s26 = int_to_ptr.vmem [resolvable:$true] %s447_s26 }
  0x20   :  { %247 = vmatpush.bf16.msra.mxu0 %v507_v25  ;;  %v471_v59 = vor.u32 %v592_v54, %v468_v55  ;;  %v623_v62 = vld [vmem:[#allocation8 + $0x78] sm:$0xff]  ;;  %411 = vmatpush.bf16.msra.mxu2 %v615_v61  ;;  %v613_v10 = vld [vmem:[#allocation8 + $0x28] sm:$0xff]  ;;  %v612_v14 = vld [vmem:[#allocation8 + $0x20] sm:$0xff] }
  0x21   :  { %261 = vmatpush.bf16.msra.mxu1 %v511_v27  ;;  %425 = vmatpush.bf16.msra.mxu3 %v623_v62  ;;  %v621_v11 = vld [vmem:[#allocation8 + $0x68] sm:$0xff]  ;;  %v620_v15 = vld [vmem:[#allocation8 + $0x60] sm:$0xff]  ;;  %v633_v25 = vld [vmem:[#allocation5] ss:$0 sm:$0xff] }
  0x22   :  { %v634_v30 = vld [vmem:[%s872_s2] ss:$0 sm:$0xff]  ;;  %v611_v35 = vld [vmem:[#allocation8 + $0x18] sm:$0xff]  ;;  %v610_v36 = vld [vmem:[#allocation8 + $0x10] sm:$0xff] }
  0x23   :  { %v617_v38 = vld [vmem:[#allocation8 + $0x48] sm:$0xff]  ;;  %v616_v40 = vld [vmem:[#allocation8 + $0x40] sm:$0xff] }
  0x24   :  { %248 = vmatpush.bf16.msra.mxu0 %v499_v31  ;;  %v159_v41 = vld [vmem:[%s874_s4] sm:$0x3] }
  0x25   :  { %262 = vmatpush.bf16.msra.mxu1 %v503_v33  ;;  %v161_v44 = vperm.slane %v159_v41, 0 }
  0x28   :  { %249 = vmatpush.bf16.msra.mxu0 %v491_v37  ;;  %v618_v37 = vld [vmem:[#allocation8 + $0x50] sm:$0xff] }
  0x29   :  { %263 = vmatpush.bf16.msra.mxu1 %v495_v39  ;;  %v608_v39 = vld [vmem:[#allocation8] sm:$0xff] }
  0x2c   :  { %250 = vmatpush.bf16.msra.mxu0 %v483_v43 }
  0x2d   :  { %264 = vmatpush.bf16.msra.mxu1 %v487_v45  ;;  %v162_v45 = vperm.slane %v159_v41, 1 }
  0x30   :  { %251 = vmatpush.bf16.msra.mxu0 %v475_v49 }
  0x31   :  { %265 = vmatpush.bf16.msra.mxu1 %v479_v53 }
  0x34   :  { %252 = vmatpush.bf16.msra.mxu0 %v467_v57 }
  0x35   :  { %266 = vmatpush.bf16.msra.mxu1 %v471_v59 }
  0x88   :  { %v91_v2 = vpop.xlane.xlu0 %90 }
  0x89   :  { %v94_v3 = vmul.f32 0.0078125, %v91_v2 }
  0x8b   :  { %v842_v4 = vsub.f32 %v835_v0, %v94_v3  ;;  %v614_v3 = vld [vmem:[#allocation8 + $0x30] sm:$0xff] }
  0x8c   :  { %412 = vmatpush.bf16.msra.mxu2 %v614_v3 }
  0x8d   :  { %v98_v5 = vmul.f32 %v842_v4, %v842_v4 }
  0x8f   :  { %100 = vadd.xlane.f32.xlu1 %v98_v5  ;;  %v622_v5 = vld [vmem:[#allocation8 + $0x70] sm:$0xff] }
  0x90   :  { %v93_v6 = vpop.xlane.xlu0 %92  ;;  %426 = vmatpush.bf16.msra.mxu3 %v622_v5  ;;  %413 = vmatpush.bf16.msra.mxu2 %v613_v10 }
  0x91   :  { %v95_v7 = vmul.f32 0.0078125, %v93_v6 }
  0x93   :  { %v847_v8 = vsub.f32 %v838_v1, %v95_v7 }
  0x94   :  { %427 = vmatpush.bf16.msra.mxu3 %v621_v11  ;;  %414 = vmatpush.bf16.msra.mxu2 %v612_v14 }
  0x95   :  { %v99_v9 = vmul.f32 %v847_v8, %v847_v8 }
  0x97   :  { %102 = vadd.xlane.f32.xlu1 %v99_v9 }
  0x98   :  { %428 = vmatpush.bf16.msra.mxu3 %v620_v15  ;;  %415 = vmatpush.bf16.msra.mxu2 %v611_v35 }
  0x9c   :  { %416 = vmatpush.bf16.msra.mxu2 %v610_v36 }
 0x102   :  { %v101_v56 = vpop.xlane.xlu1 %100 }
 0x103   :  { %v104_v58 = vmul.f32 0.0078125, %v101_v56 }
 0x105   :  { %v106_v60 = vadd.f32 1e-05, %v104_v58  ;;  %v635_v58 = vld [vmem:[%s876_s6] ss:$0 sm:$0xff] }
 0x107   :  { %636 = vrsqrt.f32 %v106_v60  ;;  %vm114_vm1 = vweird.f32 %v106_v60 }
 0x10a   :  { %v103_v63 = vpop.xlane.xlu1 %102 }
 0x10b   :  { %v105_v2 = vmul.f32 0.0078125, %v103_v63 }
 0x10d   :  { %v637_v6 = vpop.eup %636  ;;  %v107_v7 = vadd.f32 1e-05, %v105_v2 }
 0x10e   :  { %v109_v9 = vmul.f32 %v637_v6, %v106_v60  ;;  %vm115_vm0 = vweird.f32 %v637_v6 }
 0x10f   :  { %638 = vrsqrt.f32 %v107_v7  ;;  %vm116_vm2 = vmor %vm114_vm1, %vm115_vm0  ;;  %vm124_vm4 = vweird.f32 %v107_v7 }
 0x110   :  { %v110_v12 = vmul.f32 %v637_v6, %v109_v9 }
 0x112   :  { %v111_v13 = vmul.f32 0.5, %v110_v12 }
 0x114   :  { %v112_v16 = vsub.f32 1.5, %v111_v13 }
 0x115   :  { %v639_v17 = vpop.eup %638 }
 0x116   :  { %v113_v18 = vmul.f32 %v637_v6, %v112_v16  ;;  %v119_v19 = vmul.f32 %v639_v17, %v107_v7  ;;  %vm125_vm3 = vweird.f32 %v639_v17 }
 0x117   :  { %vm126_vm5 = vmor %vm124_vm4, %vm125_vm3 }
 0x118   :  { %v120_v20 = vmul.f32 %v639_v17, %v119_v19  ;;  %v117_v22 = vsel %vm116_vm2, %v637_v6, %v113_v18 }
 0x119   :  { %v128_v24 = vmul.f32 %v117_v22, %v842_v4  ;;  %v619_v4 = vld [vmem:[#allocation8 + $0x58] sm:$0xff] }
 0x11a   :  { %v121_v21 = vmul.f32 0.5, %v120_v20  ;;  %429 = vmatpush.bf16.msra.mxu3 %v619_v4 }
 0x11b   :  { %v134_v29 = vmul.f32 %v633_v25, %v128_v24 }
 0x11c   :  { %v122_v23 = vsub.f32 1.5, %v121_v21 }
 0x11d   :  { %v140_v32 = vadd.f32 %v634_v30, %v134_v29 }
 0x11e   :  { %v123_v26 = vmul.f32 %v639_v17, %v122_v23  ;;  %430 = vmatpush.bf16.msra.mxu3 %v618_v37 }
 0x120   :  { %v127_v27 = vsel %vm126_vm5, %v639_v17, %v123_v26 }
 0x121   :  { %v129_v28 = vmul.f32 %v127_v27, %v847_v8  ;;  %v609_v8 = vld [vmem:[#allocation8 + $0x8] sm:$0xff] }
 0x122   :  { %417 = vmatpush.bf16.msra.mxu2 %v609_v8  ;;  %431 = vmatpush.bf16.msra.mxu3 %v617_v38 }
 0x123   :  { %v135_v31 = vmul.f32 %v633_v25, %v129_v28 }
 0x125   :  { %v141_v33 = vadd.f32 %v634_v30, %v135_v31 }
 0x126   :  { %418 = vmatpush.bf16.msra.mxu2 %v608_v39  ;;  %432 = vmatpush.bf16.msra.mxu3 %v616_v40 }
 0x127   :  { %v142_v34 = vpack.c.bf16 %v141_v33, %v140_v32 }
 0x129   :  { %253 = vmatmul.bf16.vlgmr.msra.gmra.mxu0 %v142_v34  ;;  %267 = vmatmul.bf16.vlgmr.msra.gmra.mxu1 %v142_v34 }
 0x1a6   :  { %v254_v42 = vpop.f32.mrf.mxu0  ;;  %v268_v43 = vpop.f32.mrf.mxu1 }
 0x1a7   :  { %v255_v46 = vadd.f32 %v254_v42, %v161_v44  ;;  %v269_v47 = vadd.f32 %v268_v43, %v162_v45 }
 0x1a9   :  { %v273_v52 = vmax.f32 %v255_v46, 0.0  ;;  %v274_v53 = vmax.f32 %v269_v47, 0.0 }
 0x1ae   :  { %v256_v48 = vpop.f32.mrf.mxu0  ;;  %v270_v49 = vpop.f32.mrf.mxu1 }
 0x1af   :  { %v257_v50 = vadd.f32 %v256_v48, %v161_v44  ;;  %v271_v51 = vadd.f32 %v270_v49, %v162_v45 }
 0x1b1   :  { %v275_v54 = vmax.f32 %v257_v50, 0.0  ;;  %v276_v55 = vmax.f32 %v271_v51, 0.0 }
 0x1b3   :  { %v277_v56 = vpack.c.bf16 %v275_v54, %v273_v52  ;;  %v278_v57 = vpack.c.bf16 %v276_v55, %v274_v53 }
 0x1b5   :  { %419 = vmatmul.bf16.vlgmr.msra.gmra.mxu2 %v277_v56  ;;  %433 = vmatmul.bf16.vlgmr.msra.gmra.mxu3 %v278_v57 }
 0x238   :  { %v420_v59 = vpop.f32.mrf.mxu2  ;;  %v434_v60 = vpop.f32.mrf.mxu3 }
 0x239   :  { %v421_v61 = vadd.f32 %v635_v58, %v420_v59 }
 0x23b   :  { %v435_v62 = vadd.f32 %v434_v60, %v421_v61 }
 0x23d   :  { %v439_v63 = vadd.f32 %v435_v62, %v835_v0 }
 0x23f   :  { %441 = vst [vmem:[#allocation10] sm:$0xff] %v439_v63 }
 0x240   :  { %v422_v2 = vpop.f32.mrf.mxu2  ;;  %v436_v5 = vpop.f32.mrf.mxu3 }
 0x241   :  { %v423_v3 = vadd.f32 %v635_v58, %v422_v2 }
 0x243   :  { %v437_v6 = vadd.f32 %v436_v5, %v423_v3 }
 0x245   :  { %v440_v7 = vadd.f32 %v437_v6, %v838_v1 }
 0x247   :  { %442 = vst [vmem:[#allocation10 + $0x8] sm:$0xff] %v440_v7 }
 0x248   :  { %455 = dma.vmem_to_hbm [thread:$0]  %s448_s26, 256, %s450_s29, [#allocation4], %s770_s11, %s770_s11, %s771_s12  }
 0x249   :  { %766 = dma.done.wait [#allocation4], 256  }
 0x24a   :  { %767 = vsyncadd [#allocation4], 4294967040 }
 0x24b   :  { %460 = vsyncpa [#allocation3], 1 }
 0x24c   :  { %461 = vsyncpa [#allocation6], 1 }
 0x24d   :  { %462 = vsyncpa [#allocation9], 1 }
 0x24e   :  { %463 = vsyncpa [#allocation4], 1 }

</bundles_post_ra>
